<compile_context>
chip_gen: v6e
topology: v6e:2x2x1
jax: 0.10.0
libtpu: 0.0.40
codegen_flags: <defaults>
</compile_context>

<pallas_src>
import math
import jax
import jax.numpy as jnp
from jax.experimental import pallas as pl
from jax.experimental.pallas import tpu as pltpu

_MIB = 1024 * 1024


def _round_up(x, m):
    return ((x + m - 1) // m) * m


def _cdiv(a, b):
    return (a + b - 1) // b


# ----------------------------- kernels --------------------------------------


def _ffn_kernel_direct(x_ref, w1_ref, b1_ref, w2_ref, b2_ref, o_ref):
    """float32 output: accumulate straight into the resident output block."""
    h_idx = pl.program_id(1)
    hidden = jnp.dot(x_ref[...], w1_ref[...], preferred_element_type=jnp.float32)
    hidden = jnp.maximum(hidden + b1_ref[...], 0.0).astype(w2_ref.dtype)
    partial = jnp.dot(hidden, w2_ref[...], preferred_element_type=jnp.float32)

    @pl.when(h_idx == 0)
    def _init():
        o_ref[...] = partial + b2_ref[...]

    @pl.when(h_idx != 0)
    def _accum():
        o_ref[...] += partial


def _ffn_kernel_scratch(x_ref, w1_ref, b1_ref, w2_ref, b2_ref, o_ref, acc_ref):
    """Non-f32 output: accumulate in an f32 VMEM scratch, cast on the last step."""
    h_idx = pl.program_id(1)

    @pl.when(h_idx == 0)
    def _init():
        acc_ref[...] = jnp.zeros_like(acc_ref)

    hidden = jnp.dot(x_ref[...], w1_ref[...], preferred_element_type=jnp.float32)
    hidden = jnp.maximum(hidden + b1_ref[...], 0.0).astype(w2_ref.dtype)
    acc_ref[...] += jnp.dot(hidden, w2_ref[...], preferred_element_type=jnp.float32)

    @pl.when(h_idx == pl.num_programs(1) - 1)
    def _finalize():
        o_ref[...] = (acc_ref[...] + b2_ref[...]).astype(o_ref.dtype)


# --------------------------- sizing helpers ----------------------------------


def _tpu_vmem_capacity():
    try:
        return int(pltpu.get_tpu_info().vmem_capacity_bytes)
    except Exception:
        return 64 * _MIB  # conservative: v7x per-TensorCore VMEM


def _is_dual_tensorcore(vmem_cap):
    try:
        kind = jax.devices()[0].device_kind.lower()
        if "v7" in kind:
            return True
    except Exception:
        pass
    # Among supported generations only v7x has < 100 MiB of VMEM per core.
    return vmem_cap < 100 * _MIB


def _choose_hidden_tile(H, target):
    """Return (th, H_pad). th is 128-aligned or equal to full H; H_pad % th == 0."""
    target = max(128, (target // 128) * 128)
    if H <= target:
        return H, H
    t = target
    while t >= 128:
        if H % t == 0:
            return t, H
        t -= 128
    # No 128-aligned divisor: zero-pad H. Padded hidden units see zero weights
    # and zero bias, so ReLU gives exactly 0 and they contribute nothing.
    return target, _round_up(H, target)


def _vmem_footprint(tm, th, D, x_isz, w_isz, o_isz, use_scratch):
    f = 0
    f += 2 * tm * D * x_isz                     # x tile (double buffered)
    f += 2 * D * th * w_isz                     # W1 chunk
    f += 2 * 8 * _round_up(th, 128) * w_isz     # b1 chunk (tile-padded)
    f += 2 * th * D * w_isz                     # W2 chunk
    f += 2 * 8 * _round_up(D, 128) * w_isz      # b2 (tile-padded)
    f += 2 * tm * D * o_isz                     # out tile
    if use_scratch:
        f += tm * D * 4                         # f32 accumulator scratch
    f += tm * th * (4 + w_isz)                  # hidden temp (f32) + cast copy
    return f


# ------------------------------ wrapper ---------------------------------------


def feed_forward(x, w1, b1, w2, b2, *, tm=None, th=None):
    """FeedForward forward pass: relu(x @ w1 + b1) @ w2 + b2.

    x: (..., D).  w1: (D, H), b1: (H,), w2: (H, D), b2: (D,).
    tm / th: optional manual overrides of the token / hidden tile sizes.
    """
    orig_shape = x.shape
    D = orig_shape[-1]
    H = w1.shape[1]
    x2 = x.reshape(-1, D)
    M = x2.shape[0]

    x_isz = jnp.dtype(x.dtype).itemsize
    w_isz = jnp.dtype(w1.dtype).itemsize
    o_isz = x_isz
    use_scratch = x.dtype != jnp.float32

    vmem_cap = _tpu_vmem_capacity()
    dual_tc = _is_dual_tensorcore(vmem_cap)
    big_vmem = vmem_cap >= 100 * _MIB  # v5e / v6e have 128 MiB physical VMEM

    # Per-generation tile targets.
    #   big VMEM (v5e/v6e): larger token tile -> fewer HBM weight re-reads.
    #   small VMEM (v7x):   smaller hidden chunk for f32 weights; the weight
    #                       double-buffers are the binding VMEM cost.
    if th is None:
        th = 512 if (big_vmem or w_isz <= 2) else 256
    if tm is None:
        tm = 512 if big_vmem else 256

    th, H_pad = _choose_hidden_tile(H, th)

    # Token tiling: pick the number of row tiles first so padding stays small,
    # then derive an 8-aligned tm.  On dual-TensorCore chips keep >= 2 row
    # tiles so the "parallel" axis shards across both cores.
    nrow = max(1, _cdiv(M, max(tm, 8)))
    if dual_tc and M > 8:
        nrow = max(nrow, 2)
    tm = _round_up(_cdiv(M, nrow), 8)

    # Shrink the token tile until the working set fits the VMEM budget.
    budget = int(vmem_cap * (0.85 if big_vmem else 0.78))
    while tm > 8 and _vmem_footprint(tm, th, D, x_isz, w_isz, o_isz, use_scratch) > budget:
        nrow += 1
        tm = _round_up(_cdiv(M, nrow), 8)
    # TODO(synk): if D >= 8192 also tile the output D axis so tm*D*4 stays <= ~16 MiB.

    M_pad = nrow * tm

    if M_pad != M:
        x2 = jnp.pad(x2, ((0, M_pad - M), (0, 0)))
    if H_pad != H:
        w1 = jnp.pad(w1, ((0, 0), (0, H_pad - H)))
        b1 = jnp.pad(b1, ((0, H_pad - H),))
        w2 = jnp.pad(w2, ((0, H_pad - H), (0, 0)))

    b1_2d = b1.reshape(1, H_pad)
    b2_2d = b2.reshape(1, D)

    grid = (M_pad // tm, H_pad // th)

    footprint = _vmem_footprint(tm, th, D, x_isz, w_isz, o_isz, use_scratch)
    hard_cap = vmem_cap - 12 * _MIB if big_vmem else int(vmem_cap * 0.82)
    vmem_limit = int(min(hard_cap, max(32 * _MIB, footprint + footprint // 2 + 4 * _MIB)))
    vmem_limit = max(vmem_limit, footprint + 4 * _MIB)
    vmem_limit = min(vmem_limit, vmem_cap)

    # CostEstimate uses the true (un-padded) problem size.
    cost = pl.CostEstimate(
        flops=4 * M * D * H,  # two matmuls, 2*M*D*H each
        transcendentals=0,
        bytes_accessed=2 * M * D * x_isz
        + grid[0] * (w1.size + w2.size + b1_2d.size + b2_2d.size) * w_isz,
    )

    if use_scratch:
        kernel = _ffn_kernel_scratch
        scratch_shapes = [pltpu.VMEM((tm, D), jnp.float32)]
    else:
        kernel = _ffn_kernel_direct
        scratch_shapes = []

    # TODO(synk): on VMEM-bound v7x, pipeline_mode=pl.Buffered(1) on the x / b2
    # BlockSpecs reclaims a couple of MiB at the cost of one exposed DMA per row
    # tile; left off by default for portability.
    out = pl.pallas_call(
        kernel,
        out_shape=jax.ShapeDtypeStruct((M_pad, D), x.dtype),
        grid_spec=pltpu.PrefetchScalarGridSpec(
            num_scalar_prefetch=0,
            grid=grid,
            in_specs=[
                pl.BlockSpec((tm, D), lambda i, h: (i, 0)),   # x tile (resident over h)
                pl.BlockSpec((D, th), lambda i, h: (0, h)),   # W1 H-chunk
                pl.BlockSpec((1, th), lambda i, h: (0, h)),   # b1 H-chunk
                pl.BlockSpec((th, D), lambda i, h: (h, 0)),   # W2 H-chunk
                pl.BlockSpec((1, D), lambda i, h: (0, 0)),    # b2
            ],
            out_specs=pl.BlockSpec((tm, D), lambda i, h: (i, 0)),
            scratch_shapes=scratch_shapes,
        ),
        compiler_params=pltpu.CompilerParams(
            dimension_semantics=("parallel", "arbitrary"),
            vmem_limit_bytes=vmem_limit,
        ),
        cost_estimate=cost,
    )(x2, w1, b1_2d, w2, b2_2d)

    if M_pad != M:
        out = out[:M]
    return out.reshape(orig_shape)


def init_feed_forward_params(key, model_dim, hidden_dim, dtype=jnp.float32):
    """Deterministic init matching nn.Linear's U(-1/sqrt(fan_in), 1/sqrt(fan_in))."""
    k1, k2, k3, k4 = jax.random.split(key, 4)
    bound1 = 1.0 / math.sqrt(model_dim)
    bound2 = 1.0 / math.sqrt(hidden_dim)
    # stored as (in, out) so the kernel does x @ W
    w1 = jax.random.uniform(k1, (model_dim, hidden_dim), dtype, -bound1, bound1)
    b1 = jax.random.uniform(k2, (hidden_dim,), dtype, -bound1, bound1)
    w2 = jax.random.uniform(k3, (hidden_dim, model_dim), dtype, -bound2, bound2)
    b2 = jax.random.uniform(k4, (model_dim,), dtype, -bound2, bound2)
    return w1, b1, w2, b2


if __name__ == "__main__":
    batch, seq, model_dim, hidden_dim = 2, 8, 32, 64

    key = jax.random.PRNGKey(0)
    kx, kp = jax.random.split(key)
    x = jax.random.normal(kx, (batch, seq, model_dim), jnp.float32)
    w1, b1, w2, b2 = init_feed_forward_params(kp, model_dim, hidden_dim)

    out = feed_forward(x, w1, b1, w2, b2)
    out = jax.block_until_ready(out)

    # reference check in plain JAX
    ref = jnp.maximum(x @ w1 + b1, 0.0) @ w2 + b2
    assert out.shape == x.shape
    assert jnp.allclose(out, ref, atol=1e-5, rtol=1e-5), "mismatch vs reference"

    print("KERNEL_OK")
</pallas_src>

<mosaic_0001>
module attributes {stable_mosaic.version = 11 : i64} {
  func.func @_ffn_kernel_direct(%arg0: i32, %arg1: i32, %arg2: memref<8x32xf32, #tpu.memory_space<vmem>>, %arg3: memref<32x64xf32, #tpu.memory_space<vmem>>, %arg4: memref<1x64xf32, #tpu.memory_space<vmem>>, %arg5: memref<64x32xf32, #tpu.memory_space<vmem>>, %arg6: memref<1x32xf32, #tpu.memory_space<vmem>>, %arg7: memref<8x32xf32, #tpu.memory_space<vmem>>) attributes {dimension_semantics = [#tpu.dimension_semantics<parallel>, #tpu.dimension_semantics<arbitrary>], iteration_bounds = array<i64: 2, 1>, scalar_prefetch = 0 : i64, scratch_operands = 0 : i64, tpu.core_type = #tpu.core_type<tc>, window_params = [{transform_indices = @transform_0, window_bounds = array<i64: 8, 32>}, {transform_indices = @transform_1, window_bounds = array<i64: 32, 64>}, {transform_indices = @transform_2, window_bounds = array<i64: 1, 64>}, {transform_indices = @transform_3, window_bounds = array<i64: 64, 32>}, {pipeline_mode = #tpu.pipeline_mode<synchronous>, transform_indices = @transform_4, window_bounds = array<i64: 1, 32>}, {transform_indices = @transform_5, window_bounds = array<i64: 8, 32>}]} {
    %c0 = arith.constant 0 : index
    %c0_0 = arith.constant 0 : index
    %0 = vector.load %arg2[%c0, %c0_0] : memref<8x32xf32, #tpu.memory_space<vmem>>, vector<8x32xf32>
    %c0_1 = arith.constant 0 : index
    %c0_2 = arith.constant 0 : index
    %1 = vector.load %arg3[%c0_1, %c0_2] : memref<32x64xf32, #tpu.memory_space<vmem>>, vector<32x64xf32>
    %cst = arith.constant dense<0.000000e+00> : vector<8x64xf32>
    %2 = tpu.matmul %0, %1, %cst {dimension_numbers = #tpu.dot_dimension_numbers<[1], [0], [0], [1], [0, 0, 1, 1], [], []>} : vector<8x32xf32>, vector<32x64xf32>, vector<8x64xf32> -> vector<8x64xf32>
    %c0_3 = arith.constant 0 : index
    %c0_4 = arith.constant 0 : index
    %3 = vector.load %arg4[%c0_3, %c0_4] : memref<1x64xf32, #tpu.memory_space<vmem>>, vector<1x64xf32>
    %4 = vector.broadcast %3 : vector<1x64xf32> to vector<8x64xf32>
    %5 = arith.addf %2, %4 : vector<8x64xf32>
    %cst_5 = arith.constant 0.000000e+00 : f32
    %6 = vector.broadcast %cst_5 : f32 to vector<8x64xf32>
    %7 = arith.maximumf %5, %6 : vector<8x64xf32>
    %c0_6 = arith.constant 0 : index
    %c0_7 = arith.constant 0 : index
    %8 = vector.load %arg5[%c0_6, %c0_7] : memref<64x32xf32, #tpu.memory_space<vmem>>, vector<64x32xf32>
    %cst_8 = arith.constant dense<0.000000e+00> : vector<8x32xf32>
    %9 = tpu.matmul %7, %8, %cst_8 {dimension_numbers = #tpu.dot_dimension_numbers<[1], [0], [0], [1], [0, 0, 1, 1], [], []>} : vector<8x64xf32>, vector<64x32xf32>, vector<8x32xf32> -> vector<8x32xf32>
    %c0_i32 = arith.constant 0 : i32
    %10 = arith.cmpi eq, %arg1, %c0_i32 : i32
    %11 = arith.extui %10 : i1 to i32
    %c0_i32_9 = arith.constant 0 : i32
    %12 = arith.cmpi ne, %11, %c0_i32_9 : i32
    scf.if %12 {
      %c0_12 = arith.constant 0 : index
      %c0_13 = arith.constant 0 : index
      %16 = vector.load %arg6[%c0_12, %c0_13] : memref<1x32xf32, #tpu.memory_space<vmem>>, vector<1x32xf32>
      %17 = vector.broadcast %16 : vector<1x32xf32> to vector<8x32xf32>
      %18 = arith.addf %9, %17 : vector<8x32xf32>
      %c0_14 = arith.constant 0 : index
      %c0_15 = arith.constant 0 : index
      %19 = vector.load %arg7[%c0_14, %c0_15] : memref<8x32xf32, #tpu.memory_space<vmem>>, vector<8x32xf32>
      tpu.vector_store %arg7[%c0_14, %c0_15], %18 {strides = array<i32>} : memref<8x32xf32, #tpu.memory_space<vmem>>, vector<8x32xf32>,
    } else {
    }
    %c0_i32_10 = arith.constant 0 : i32
    %13 = arith.cmpi ne, %arg1, %c0_i32_10 : i32
    %14 = arith.extui %13 : i1 to i32
    %c0_i32_11 = arith.constant 0 : i32
    %15 = arith.cmpi ne, %14, %c0_i32_11 : i32
    scf.if %15 {
      %c0_12 = arith.constant 0 : index
      %c0_13 = arith.constant 0 : index
      %16 = vector.load %arg7[%c0_12, %c0_13] : memref<8x32xf32, #tpu.memory_space<vmem>>, vector<8x32xf32>
      %17 = arith.addf %16, %9 : vector<8x32xf32>
      %c0_14 = arith.constant 0 : index
      %c0_15 = arith.constant 0 : index
      %18 = vector.load %arg7[%c0_14, %c0_15] : memref<8x32xf32, #tpu.memory_space<vmem>>, vector<8x32xf32>
      tpu.vector_store %arg7[%c0_14, %c0_15], %17 {strides = array<i32>} : memref<8x32xf32, #tpu.memory_space<vmem>>, vector<8x32xf32>,
    } else {
    }
    return
  }
  func.func @transform_0(%arg0: i32, %arg1: i32) -> (i32, i32) {
    %c0_i32 = arith.constant 0 : i32
    %c0_i32_0 = arith.constant 0 : i32
    return %arg0, %c0_i32 : i32, i32
  }
  func.func @transform_1(%arg0: i32, %arg1: i32) -> (i32, i32) {
    %c0_i32 = arith.constant 0 : i32
    %c0_i32_0 = arith.constant 0 : i32
    return %c0_i32, %arg1 : i32, i32
  }
  func.func @transform_2(%arg0: i32, %arg1: i32) -> (i32, i32) {
    %c0_i32 = arith.constant 0 : i32
    %c0_i32_0 = arith.constant 0 : i32
    return %c0_i32, %arg1 : i32, i32
  }
  func.func @transform_3(%arg0: i32, %arg1: i32) -> (i32, i32) {
    %c0_i32 = arith.constant 0 : i32
    %c0_i32_0 = arith.constant 0 : i32
    return %arg1, %c0_i32 : i32, i32
  }
  func.func @transform_4(%arg0: i32, %arg1: i32) -> (i32, i32) {
    %c0_i32 = arith.constant 0 : i32
    %c0_i32_0 = arith.constant 0 : i32
    %c0_i32_1 = arith.constant 0 : i32
    return %c0_i32, %c0_i32_0 : i32, i32
  }
  func.func @transform_5(%arg0: i32, %arg1: i32) -> (i32, i32) {
    %c0_i32 = arith.constant 0 : i32
    %c0_i32_0 = arith.constant 0 : i32
    return %arg0, %c0_i32 : i32, i32
  }
}

</mosaic_0001>

<bundles_post_ra>
// kernel: tpu_custom_call.1
= control target key start
LH: loop header
LB: loop body
LE: loop exit
PB: predicated region body
PF: predicated region fallthrough
CT: control target
= control target key end

     0   :  { %10 = vsyncpa [#allocation3], 0  ;;  %s978_s0 = inlined_call_operand.vmem [shape: f32[16,32], index: 0, kind: input, shape index: {}]   ;;  %s979_s1 = inlined_call_operand.vmem [shape: f32[32,64], index: 1, kind: input, shape index: {}]   ;;  %s980_s2 = inlined_call_operand.vmem [shape: f32[1,64], index: 2, kind: input, shape index: {}]   ;;  %s981_s3 = inlined_call_operand.vmem [shape: f32[64,32], index: 3, kind: input, shape index: {}]   ;;  %s982_s4 = inlined_call_operand.vmem [shape: f32[1,32], index: 4, kind: input, shape index: {}]   ;;  %s983_s5 = inlined_call_operand.hbm [shape: f32[16,32], index: 5, kind: output, shape index: {}]  }
   0x1   :  { %12 = vsyncpa [#allocation3 + $0x1], 0  ;;  %s827_s18 = smov 0   ;;  %s829_s19 = smov 0  }
   0x2   :  { %s831_s20 = smov 0   ;;  %s833_s21 = smov 0  }
   0x3   :  { %s835_s22 = smov 0   ;;  %s837_s23 = smov 0  }
   0x4 LB: > { %s597_s24 = sadd.s32 4294967295, %s792_s23   ;;  %s598_s25 = sadd.s32 4294967294, %s792_s23   ;;  %s792_s23 = sphi %s837_s23, %s18_s23   ;;  %s788_s22 = sphi %s835_s22, %s990_s22   ;;  %s784_s21 = sphi %s833_s21, %s989_s21   ;;  %s780_s20 = sphi %s831_s20, %s988_s20   ;;  %s776_s19 = sphi %s829_s19, %s987_s19   ;;  %s772_s18 = sphi %s827_s18, %s986_s18  }
   0x5   : > { %s30_s26 = sadd.s32 1, %s788_s22  ;;  %s162_s27 = sadd.s32 1, %s780_s20 }
   0x6   : > { %p32_p0 = scmp.ge.s32.totalorder %s30_s26, 2  ;;  %p172_p1 = scmp.ne.s32.totalorder %s780_s20, %s776_s19 }
   0x7   : > { %p173_p2 = scmp.eq.s32.totalorder %s597_s24, 1  ;;  %p178_p3 = scmp.ne.s32.totalorder %s776_s19, %s772_s18 }
   0x8   : > { %s992_s26 = smov (%p32_p0, %s30_s26), 0  ;;  %p179_p5 = scmp.eq.s32.totalorder %s598_s25, 1 }
   0x9   : > { %p867_p4 = por %p173_p2, %p172_p1  ;;  %s159_s29 = ssub.s32 %s788_s22, %s992_s26 }
   0xa   : > { %p604_p6 = scmp.ge.s32.totalorder %s792_s23, 1  ;;  %p160_p7 = scmp.eq.s32.totalorder %s159_s29, 0 }
   0xb   : > { %p874_p8 = por %p179_p5, %p178_p3  ;;  %p229_p9 = scmp.lt.s32.totalorder %s792_s23, 3 }
   0xc   : > { %s880_s6 = scalar_select %p160_p7, %s780_s20, %s162_s27  }
   0xd   : > { %p230_p10 = pnand %p604_p6, %p229_p9 }
   0xe   : > { %p268_p11 = scmp.lt.s32.totalorder (!%p230_p10), %s784_s21, 1  ;;  %s265_s8 = sand.u32 (!%p230_p10), 1, %s776_s19  }
   0xf   : > { %233 = sbr.rel (%p230_p10) target bundleno = 434 (0x1b2), region = 40  ;;  %s605_s9 = sshll.u32 (!%p230_p10), %s265_s8, 3 }
  0x10   : > { %s612_s12 = sshll.u32 (!%p230_p10), %s784_s21, 7 }
  0x11   : > { %s937_s17 = scalar_lea.hbm (!%p230_p10), %s983_s5, %s612_s12 }
  0x14   : > { %v289_v0 = vld [vmem:[%s979_s1 + $0x18] sm:$0xff]  ;;  %v794_v1 = vmov 0.0   ;;  %v288_v2 = vld [vmem:[%s979_s1 + $0x10] sm:$0xff]  ;;  %vm795_vm0 = vmmov 0   ;;  %s269_s13 = scalar_select %p268_p11, %s784_s21, 1  ;;  %v287_v5 = vld [vmem:[%s979_s1 + $0x8] sm:$0xff] }
  0x15   : > { %629 = vmatprep.subr.mxu0 %v794_v1  ;;  %637 = vmatprep.mubr.msk.f32.mxu0 %vm795_vm0, %v794_v1  ;;  %v379_v3 = vld [vmem:[%s981_s3 + $0x38] sm:$0xff]  ;;  %v378_v4 = vld [vmem:[%s981_s3 + $0x30] sm:$0xff]  ;;  %v377_v6 = vld [vmem:[%s981_s3 + $0x28] sm:$0xff]  ;;  %vm297_vm1 = vcmask 261120   ;;  %vm380_vm2 = vcmask 523264   ;;  %s796_s21 = smov [#allocation2]  }
  0x16   : > { %630 = vmatpush3.msra.mxu0 %v289_v0  ;;  %640 = vmatprep.subr.mxu1 %v794_v1  ;;  %s606_s24 = sshll.u32 %s269_s13, 3  ;;  %v286_v7 = vld [vmem:[%s979_s1] sm:$0xff]  ;;  %v375_v10 = vld [vmem:[%s981_s3 + $0x18] sm:$0xff]  ;;  %v374_v11 = vld [vmem:[%s981_s3 + $0x10] sm:$0xff]  ;;  %s267_s13 = scalar_lea.vmem [#allocation2], %s605_s9 }
  0x17   : > { %631 = vmatprep.subr.mxu0 %v794_v1  ;;  %641 = vmatpush3.msra.mxu1 %v379_v3  ;;  %s271_s10 = scalar_lea.vmem %s978_s0, %s606_s24  ;;  %v376_v9 = vld [vmem:[%s981_s3 + $0x20] sm:$0xff]  ;;  %v373_v12 = vld [vmem:[%s981_s3 + $0x8] sm:$0xff]  ;;  %s488_s14 = sshll.u32 %s267_s13, 4  ;;  %s489_s14 = int_to_ptr.vmem [resolvable:$true] %s488_s14 }
  0x18   : > { %632 = vmatpush3.msra.mxu0 %v288_v2  ;;  %642 = vmatprep.subr.mxu1 %v794_v1  ;;  %v285_v8 = vld [vmem:[%s271_s10] sm:$0xff]  ;;  %s475_s24 = scalar_lea.sflag [#allocation3], %s265_s8  ;;  %s716_s25 = scalar_lea.vmem %s489_s14, 128 }
  0x19   : > { %633 = vmatprep.subr.mxu0 %v794_v1  ;;  %643 = vmatpush3.msra.mxu1 %v378_v4  ;;  %v372_v13 = vld [vmem:[%s981_s3] sm:$0xff]  ;;  %p717_p12 = scmp.ne.s32.totalorder %s489_s14, %s716_s25  ;;  %s720_s27 = sshll.u32 %s796_s21, 4  ;;  %s721_s27 = int_to_ptr.vmem [resolvable:$false] %s720_s27 }
  0x1a   : > { %634 = vmatpush3.msra.mxu0 %v287_v5  ;;  %644 = vmatprep.subr.mxu1 %v794_v1  ;;  %v607_v14 = vld [vmem:[%s980_s2] ss:$0 sm:$0xff]  ;;  %s722_s29 = scalar_lea.vmem %s721_s27, 256  ;;  %p723_p1 = scmp.lt.s32.totalorder %s489_s14, %s721_s27 }
  0x1b   : > { %635 = vmatprep.subr.mxu0 %v794_v1  ;;  %645 = vmatpush3.msra.mxu1 %v377_v6  ;;  %v610_v19 = vld [vmem:[%s982_s4] ss:$0 sm:$0xff]  ;;  %p718_p13 = pnand %p717_p12, %p867_p4  ;;  %p724_p2 = scmp.lt.s32.totalorder %s722_s29, %s716_s25 }
  0x1c   : > { %636 = vmatpush3.msra.mxu0 %v286_v7  ;;  %646 = vmatprep.subr.mxu1 %v794_v1 }
  0x1d   : > { %638 = vmatmul.mubr.msk.f32.vlgmr.msra.gmra.mxu0 %vm297_vm1, %v285_v8  ;;  %647 = vmatpush3.msra.mxu1 %v376_v9  ;;  %p719_p0 = pneg %p718_p13  ;;  %p725_p3 = por %p724_p2, %p723_p1 }
  0x1e   : > { %648 = vmatprep.subr.mxu1 %v794_v1  ;;  %656 = vmatprep.mubr.msk.f32.mxu1 %vm795_vm0, %v794_v1 }
  0x1f   : > { %649 = vmatpush3.msra.mxu1 %v375_v10  ;;  %p726_p5 = pnand %p725_p3, %p719_p0 }
  0x20   : > { %650 = vmatprep.subr.mxu1 %v794_v1 }
  0x21   : > { %651 = vmatpush3.msra.mxu1 %v374_v11 }
  0x22   : > { %652 = vmatprep.subr.mxu1 %v794_v1 }
  0x23   : > { %653 = vmatpush3.msra.mxu1 %v373_v12 }
  0x24   : > { %654 = vmatprep.subr.mxu1 %v794_v1 }
  0x25   : > { %655 = vmatpush3.msra.mxu1 %v372_v13 }
  0xdd   : > { %v367_v15 = vpop.f32.mrf.mxu0 }
  0xde   : > { %v368_v16 = vadd.f32 %v607_v14, %v367_v15 }
  0xdf   : > { %v639_v17 = vpop.f32.mrf.mxu0 }
  0xe0   : > { %v371_v18 = vmax.f32 %v368_v16, 0.0 }
  0xe2   : > { %657 = vmatmul.mubr.msk.f32.vlgmr.msra.gmra.mxu1 %vm380_vm2, %v371_v18 }
 0x1a2   : > { %v450_v20 = vpop.f32.mrf.mxu1 }
 0x1a3   : > { %v465_v21 = vadd.f32 %v610_v19, %v450_v20 }
 0x1a4   : > { %v658_v22 = vpop.f32.mrf.mxu1 }
 0x1a5   : > { %466 = vst.msk [vmem:[%s267_s13] sm:$0xff] %vm297_vm1, %v465_v21 }
 0x1a6   : > { %729 = shalt.err (!%p726_p5)
}
 0x1a7   : > { %s730_s7 = scalar_lea.hbm %s937_s17, 128  ;;  %s734_s10 = scalar_lea.hbm %s983_s5, 256 }
 0x1a8   : > { %p731_p6 = scmp.ne.s32.totalorder %s937_s17, %s730_s7  ;;  %p735_p10 = scmp.lt.s32.totalorder %s937_s17, %s983_s5 }
 0x1a9   : > { %p736_p11 = scmp.lt.s32.totalorder %s734_s10, %s730_s7 }
 0x1aa   : > { %p732_p7 = pnand %p731_p6, %p867_p4 }
 0x1ab   : > { %p737_p12 = por %p736_p11, %p735_p10 }
 0x1ac   : > { %p733_p9 = pneg %p732_p7 }
 0x1ae   : > { %p738_p13 = pnand %p737_p12, %p733_p9 }
 0x1b0   : > { %741 = shalt.err (!%p738_p13)
}
 0x1b1   : > { %659 = dma.vmem_to_hbm [thread:$0]  (%p867_p4), %s489_s14, 128, %s937_s17, %s475_s24  }
 0x1b2 PF: > { %p665_p0 = scmp.ge.s32.totalorder %s792_s23, 2  ;;  %s500_s13 = sand.u32 1, %s772_s18  }
 0x1b3   : > { %s501_s15 = scalar_lea.sflag [#allocation3], %s500_s13 }
 0x1b4   : > { %p662_p1 = pnand %p665_p0, %p874_p8 }
 0x1b6   : > { %p663_p2 = pneg %p662_p1 }
 0x1b8   : > { %767 = dma.done.wait (%p663_p2), %s501_s15, 128  }
 0x1b9   : > { %769 = vsyncadd (%p663_p2), %s501_s15, 4294967168  ;;  %s18_s23 = sadd.s32 1, %s792_s23   ;;  %s986_s18 = smov %s776_s19 }
 0x1ba   : > { %p15_p3 = scmp.ge.s32.totalorder %s18_s23, 4   ;;  %s987_s19 = smov %s780_s20 }
 0x1bb   : > { %s988_s20 = smov %s880_s6  ;;  %s989_s21 = smov %s788_s22 }
 0x1bc   : > { %s990_s22 = smov %s992_s26  ;;  %17 = sbr.rel (!%p15_p3) target bundleno = 4 (0x4), region = 92 }
 0x1c1   :  { %506 = vsyncpa [#allocation3], 1 }
 0x1c2   :  { %508 = vsyncpa [#allocation3 + $0x1], 1 }

</bundles_post_ra>
